<compile_context>
chip_gen: v7x
topology: tpu7x:2x2x1
jax: 0.10.0
libtpu: 0.0.40
codegen_flags: <defaults>
</compile_context>

<pallas_src>
import jax
import jax.numpy as jnp
from jax import lax
from jax.experimental import pallas as pl
from jax.experimental.pallas import tpu as pltpu

NEG_SLOPE = 0.01  # PyTorch nn.LeakyReLU default negative_slope


def _leaky_relu(x):
    # Equivalent to where(x>0, x, 0.01*x) for slope in (0,1), incl. NaN
    # propagation, but only mul+max on the VPU.
    return jnp.maximum(x, NEG_SLOPE * x)


def _relu(x):
    return jnp.maximum(x, 0.0)


def mlp_kernel(x_ref,
               w1_ref, b1_ref,
               w2_ref, b2_ref,
               w3_ref, b3_ref,
               w4_ref, b4_ref,
               w5_ref, b5_ref,
               w6_ref, b6_ref,
               o_ref):
    # x_ref: (bt, in_features) -- batch on sublanes straight from HBM.
    # fc1 contracts the feature axis of both operands, so the transpose is
    # folded into the MXU operand feed and the output (128, bt) is already
    # lane-dense along the batch.
    x = x_ref[...]
    y = lax.dot_general(w1_ref[...], x, (((1,), (1,)), ((), ())),
                        preferred_element_type=jnp.float32)
    h = _leaky_relu(y.astype(b1_ref.dtype) + b1_ref[...])        # (128, bt)

    def dense(h, w_ref, b_ref, act):
        # MXU matmul in the weights' dtype, f32 accumulation; the epilogue
        # (bias + activation) runs in the bias dtype (f32 or bf16).
        y = jnp.dot(w_ref[...], h, preferred_element_type=jnp.float32)
        return act(y.astype(b_ref.dtype) + b_ref[...])

    h = dense(h, w2_ref, b2_ref, _leaky_relu)    # (64, bt)
    h = dense(h, w3_ref, b3_ref, _relu)          # (32, bt)
    h = dense(h, w4_ref, b4_ref, _leaky_relu)    # (32, bt)
    h = dense(h, w5_ref, b5_ref, _leaky_relu)    # (16, bt)

    # fc6 (16 -> 1): VPU multiply + sublane reduction (XLU) -> lane-dense
    # (1, bt) row directly; no MXU pass, no masked partial stores.
    w6 = w6_ref[...].astype(jnp.float32)          # (16, 1)
    o_ref[...] = (jnp.sum(w6 * h.astype(jnp.float32), axis=0, keepdims=True)
                  + b6_ref[...])


def _round_up(v, m):
    return -(-v // m) * m


def stock_price_predictor(x, params, *, batch_tile=2048,
                          compute_dtype=jnp.float32):
    """Fused forward pass.

    x:      (B, input_size) float32
    params: list of 6 (W, b) tuples in PyTorch nn.Linear layout:
            W: (out_features, in_features), b: (out_features,)
    """
    B, in_features = x.shape

    # --- batch-tile selection ------------------------------------------------
    # Large tiles amortise per-grid-step overhead (VMEM is never the binding
    # constraint here).  Cap at ceil(B/2) rounded up to 128 so the grid keeps
    # >= 2 "parallel" steps whenever possible (v7x megacore sharding); on
    # single-TC chips the extra step costs ~0.35 us, negligible.
    bt = _round_up(max(int(batch_tile), 128), 128)
    cap = max(128, _round_up(-(-B // 2), 128))
    bt = min(bt, cap)

    n_tiles = pl.cdiv(B, bt)
    Bp = n_tiles * bt

    # Cast first (halves DMA bytes in bf16), then zero-pad extra rows on the
    # contiguous batch axis if the batch is ragged.
    x_in = jnp.asarray(x, compute_dtype)
    if Bp != B:
        x_in = jnp.pad(x_in, ((0, Bp - B), (0, 0)))

    in_specs = [pl.BlockSpec((bt, in_features), lambda i: (i, 0))]
    flat = [x_in]
    n_layers = len(params)
    for li, (w, b) in enumerate(params):
        last = li == n_layers - 1
        if last:
            w_k = jnp.asarray(w, compute_dtype).T                 # (16, 1)
            b_k = jnp.asarray(b, jnp.float32).reshape(-1, 1)      # (1, 1) f32
        else:
            w_k = jnp.asarray(w, compute_dtype)                   # (out, in)
            b_k = jnp.asarray(b, compute_dtype).reshape(-1, 1)    # (out, 1)
        # Constant index maps -> parameter blocks stay resident in VMEM.
        in_specs.append(pl.BlockSpec(w_k.shape, lambda i: (0, 0)))
        in_specs.append(pl.BlockSpec(b_k.shape, lambda i: (0, 0)))
        flat += [w_k, b_k]

    out_specs = pl.BlockSpec((1, bt), lambda i: (0, i))

    # Advisory cost estimate for the XLA scheduler.
    dims = [in_features] + [w.shape[0] for (w, _) in params]
    flops = int(2 * Bp * sum(a * b for a, b in zip(dims[:-1], dims[1:])))
    param_bytes = int(sum(int(a.size) * a.dtype.itemsize for a in flat[1:]))
    bytes_accessed = int(int(x_in.size) * x_in.dtype.itemsize + Bp * 4
                         + param_bytes)

    out = pl.pallas_call(
        mlp_kernel,
        out_shape=jax.ShapeDtypeStruct((1, Bp), jnp.float32),
        grid_spec=pltpu.PrefetchScalarGridSpec(
            num_scalar_prefetch=0,
            grid=(n_tiles,),
            in_specs=in_specs,
            out_specs=out_specs,
        ),
        compiler_params=pltpu.CompilerParams(
            dimension_semantics=("parallel",)),
        cost_estimate=pl.CostEstimate(
            flops=flops, transcendentals=0, bytes_accessed=bytes_accessed),
    )(*flat)

    return out[0, :B].reshape(B, 1)


def init_params(key, input_size):
    """Deterministic init mimicking nn.Linear (uniform +-1/sqrt(fan_in)),
    stored in PyTorch layout: W (out, in), b (out,)."""
    dims = [input_size, 128, 64, 32, 32, 16, 1]
    params = []
    for li in range(6):
        fan_in, fan_out = dims[li], dims[li + 1]
        key, kw, kb = jax.random.split(key, 3)
        bound = fan_in ** -0.5
        w = jax.random.uniform(kw, (fan_out, fan_in), jnp.float32, -bound, bound)
        b = jax.random.uniform(kb, (fan_out,), jnp.float32, -bound, bound)
        params.append((w, b))
    return params


def reference_forward(x, params):
    acts = [_leaky_relu, _leaky_relu, _relu, _leaky_relu, _leaky_relu, None]
    h = x
    for (w, b), act in zip(params, acts):
        h = h @ w.T + b
        if act is not None:
            h = act(h)
    return h


if __name__ == "__main__":
    key = jax.random.PRNGKey(0)
    input_size = 32
    params = init_params(key, input_size)

    # Test 1: f32 path.  batch=512 with the >=2-step cap gives a 2-step
    # "parallel" grid (both TensorCores busy on v7x).
    key, kx = jax.random.split(key)
    batch = 512
    x = jax.random.normal(kx, (batch, input_size), jnp.float32)
    out = jax.block_until_ready(stock_price_predictor(x, params))
    with jax.default_matmul_precision("highest"):
        ref = reference_forward(x, params)
    assert out.shape == (batch, 1)
    assert jnp.allclose(out, ref, atol=2e-2, rtol=2e-2)

    # Test 2: ragged batch (exercises the contiguous zero-pad) + bf16 compute
    # path (bf16 MXU operands, f32 accumulation, bf16 epilogue) with a loose
    # tolerance.
    key, kx2 = jax.random.split(key)
    batch2 = 100
    x2 = jax.random.normal(kx2, (batch2, input_size), jnp.float32)
    out2 = jax.block_until_ready(
        stock_price_predictor(x2, params, compute_dtype=jnp.bfloat16))
    with jax.default_matmul_precision("highest"):
        ref2 = reference_forward(x2, params)
    assert out2.shape == (batch2, 1)
    assert bool(jnp.all(jnp.isfinite(out2)))
    assert jnp.allclose(out2, ref2, atol=1.5e-1, rtol=1.5e-1)

    print("KERNEL_OK")
</pallas_src>

<mosaic_0001>
module attributes {stable_mosaic.version = 11 : i64} {
  func.func @mlp_kernel(%arg0: i32, %arg1: memref<256x32xf32, #tpu.memory_space<vmem>>, %arg2: memref<128x32xf32, #tpu.memory_space<vmem>>, %arg3: memref<128x1xf32, #tpu.memory_space<vmem>>, %arg4: memref<64x128xf32, #tpu.memory_space<vmem>>, %arg5: memref<64x1xf32, #tpu.memory_space<vmem>>, %arg6: memref<32x64xf32, #tpu.memory_space<vmem>>, %arg7: memref<32x1xf32, #tpu.memory_space<vmem>>, %arg8: memref<32x32xf32, #tpu.memory_space<vmem>>, %arg9: memref<32x1xf32, #tpu.memory_space<vmem>>, %arg10: memref<16x32xf32, #tpu.memory_space<vmem>>, %arg11: memref<16x1xf32, #tpu.memory_space<vmem>>, %arg12: memref<16x1xf32, #tpu.memory_space<vmem>>, %arg13: memref<1x1xf32, #tpu.memory_space<vmem>>, %arg14: memref<1x256xf32, #tpu.memory_space<vmem>>) attributes {dimension_semantics = [#tpu.dimension_semantics<parallel>], iteration_bounds = array<i64: 2>, scalar_prefetch = 0 : i64, scratch_operands = 0 : i64, tpu.core_type = #tpu.core_type<tc>, window_params = [{transform_indices = @transform_0, window_bounds = array<i64: 256, 32>}, {pipeline_mode = #tpu.pipeline_mode<synchronous>, transform_indices = @transform_1, window_bounds = array<i64: 128, 32>}, {pipeline_mode = #tpu.pipeline_mode<synchronous>, transform_indices = @transform_2, window_bounds = array<i64: 128, 1>}, {pipeline_mode = #tpu.pipeline_mode<synchronous>, transform_indices = @transform_3, window_bounds = array<i64: 64, 128>}, {pipeline_mode = #tpu.pipeline_mode<synchronous>, transform_indices = @transform_4, window_bounds = array<i64: 64, 1>}, {pipeline_mode = #tpu.pipeline_mode<synchronous>, transform_indices = @transform_5, window_bounds = array<i64: 32, 64>}, {pipeline_mode = #tpu.pipeline_mode<synchronous>, transform_indices = @transform_6, window_bounds = array<i64: 32, 1>}, {pipeline_mode = #tpu.pipeline_mode<synchronous>, transform_indices = @transform_7, window_bounds = array<i64: 32, 32>}, {pipeline_mode = #tpu.pipeline_mode<synchronous>, transform_indices = @transform_8, window_bounds = array<i64: 32, 1>}, {pipeline_mode = #tpu.pipeline_mode<synchronous>, transform_indices = @transform_9, window_bounds = array<i64: 16, 32>}, {pipeline_mode = #tpu.pipeline_mode<synchronous>, transform_indices = @transform_10, window_bounds = array<i64: 16, 1>}, {pipeline_mode = #tpu.pipeline_mode<synchronous>, transform_indices = @transform_11, window_bounds = array<i64: 16, 1>}, {pipeline_mode = #tpu.pipeline_mode<synchronous>, transform_indices = @transform_12, window_bounds = array<i64: 1, 1>}, {transform_indices = @transform_13, window_bounds = array<i64: 1, 256>}]} {
    %c0 = arith.constant 0 : index
    %c0_0 = arith.constant 0 : index
    %0 = vector.load %arg1[%c0, %c0_0] : memref<256x32xf32, #tpu.memory_space<vmem>>, vector<256x32xf32>
    %c0_1 = arith.constant 0 : index
    %c0_2 = arith.constant 0 : index
    %1 = vector.load %arg2[%c0_1, %c0_2] : memref<128x32xf32, #tpu.memory_space<vmem>>, vector<128x32xf32>
    %cst = arith.constant dense<0.000000e+00> : vector<128x256xf32>
    %2 = tpu.matmul %1, %0, %cst {dimension_numbers = #tpu.dot_dimension_numbers<[1], [1], [0], [0], [0, 0, 1, 0], [], []>} : vector<128x32xf32>, vector<256x32xf32>, vector<128x256xf32> -> vector<128x256xf32>
    %c0_3 = arith.constant 0 : index
    %c0_4 = arith.constant 0 : index
    %3 = vector.load %arg3[%c0_3, %c0_4] : memref<128x1xf32, #tpu.memory_space<vmem>>, vector<128x1xf32>
    %4 = vector.broadcast %3 : vector<128x1xf32> to vector<128x256xf32>
    %5 = arith.addf %2, %4 : vector<128x256xf32>
    %cst_5 = arith.constant 0.00999999977 : f32
    %6 = vector.broadcast %cst_5 : f32 to vector<128x256xf32>
    %7 = arith.mulf %6, %5 : vector<128x256xf32>
    %8 = arith.maximumf %5, %7 : vector<128x256xf32>
    %c0_6 = arith.constant 0 : index
    %c0_7 = arith.constant 0 : index
    %9 = vector.load %arg4[%c0_6, %c0_7] : memref<64x128xf32, #tpu.memory_space<vmem>>, vector<64x128xf32>
    %cst_8 = arith.constant dense<0.000000e+00> : vector<64x256xf32>
    %10 = tpu.matmul %9, %8, %cst_8 {dimension_numbers = #tpu.dot_dimension_numbers<[1], [0], [0], [1], [0, 0, 1, 1], [], []>} : vector<64x128xf32>, vector<128x256xf32>, vector<64x256xf32> -> vector<64x256xf32>
    %c0_9 = arith.constant 0 : index
    %c0_10 = arith.constant 0 : index
    %11 = vector.load %arg5[%c0_9, %c0_10] : memref<64x1xf32, #tpu.memory_space<vmem>>, vector<64x1xf32>
    %12 = vector.broadcast %11 : vector<64x1xf32> to vector<64x256xf32>
    %13 = arith.addf %10, %12 : vector<64x256xf32>
    %cst_11 = arith.constant 0.00999999977 : f32
    %14 = vector.broadcast %cst_11 : f32 to vector<64x256xf32>
    %15 = arith.mulf %14, %13 : vector<64x256xf32>
    %16 = arith.maximumf %13, %15 : vector<64x256xf32>
    %c0_12 = arith.constant 0 : index
    %c0_13 = arith.constant 0 : index
    %17 = vector.load %arg6[%c0_12, %c0_13] : memref<32x64xf32, #tpu.memory_space<vmem>>, vector<32x64xf32>
    %cst_14 = arith.constant dense<0.000000e+00> : vector<32x256xf32>
    %18 = tpu.matmul %17, %16, %cst_14 {dimension_numbers = #tpu.dot_dimension_numbers<[1], [0], [0], [1], [0, 0, 1, 1], [], []>} : vector<32x64xf32>, vector<64x256xf32>, vector<32x256xf32> -> vector<32x256xf32>
    %c0_15 = arith.constant 0 : index
    %c0_16 = arith.constant 0 : index
    %19 = vector.load %arg7[%c0_15, %c0_16] : memref<32x1xf32, #tpu.memory_space<vmem>>, vector<32x1xf32>
    %20 = vector.broadcast %19 : vector<32x1xf32> to vector<32x256xf32>
    %21 = arith.addf %18, %20 : vector<32x256xf32>
    %cst_17 = arith.constant 0.000000e+00 : f32
    %22 = vector.broadcast %cst_17 : f32 to vector<32x256xf32>
    %23 = arith.maximumf %21, %22 : vector<32x256xf32>
    %c0_18 = arith.constant 0 : index
    %c0_19 = arith.constant 0 : index
    %24 = vector.load %arg8[%c0_18, %c0_19] : memref<32x32xf32, #tpu.memory_space<vmem>>, vector<32x32xf32>
    %cst_20 = arith.constant dense<0.000000e+00> : vector<32x256xf32>
    %25 = tpu.matmul %24, %23, %cst_20 {dimension_numbers = #tpu.dot_dimension_numbers<[1], [0], [0], [1], [0, 0, 1, 1], [], []>} : vector<32x32xf32>, vector<32x256xf32>, vector<32x256xf32> -> vector<32x256xf32>
    %c0_21 = arith.constant 0 : index
    %c0_22 = arith.constant 0 : index
    %26 = vector.load %arg9[%c0_21, %c0_22] : memref<32x1xf32, #tpu.memory_space<vmem>>, vector<32x1xf32>
    %27 = vector.broadcast %26 : vector<32x1xf32> to vector<32x256xf32>
    %28 = arith.addf %25, %27 : vector<32x256xf32>
    %cst_23 = arith.constant 0.00999999977 : f32
    %29 = vector.broadcast %cst_23 : f32 to vector<32x256xf32>
    %30 = arith.mulf %29, %28 : vector<32x256xf32>
    %31 = arith.maximumf %28, %30 : vector<32x256xf32>
    %c0_24 = arith.constant 0 : index
    %c0_25 = arith.constant 0 : index
    %32 = vector.load %arg10[%c0_24, %c0_25] : memref<16x32xf32, #tpu.memory_space<vmem>>, vector<16x32xf32>
    %cst_26 = arith.constant dense<0.000000e+00> : vector<16x256xf32>
    %33 = tpu.matmul %32, %31, %cst_26 {dimension_numbers = #tpu.dot_dimension_numbers<[1], [0], [0], [1], [0, 0, 1, 1], [], []>} : vector<16x32xf32>, vector<32x256xf32>, vector<16x256xf32> -> vector<16x256xf32>
    %c0_27 = arith.constant 0 : index
    %c0_28 = arith.constant 0 : index
    %34 = vector.load %arg11[%c0_27, %c0_28] : memref<16x1xf32, #tpu.memory_space<vmem>>, vector<16x1xf32>
    %35 = vector.broadcast %34 : vector<16x1xf32> to vector<16x256xf32>
    %36 = arith.addf %33, %35 : vector<16x256xf32>
    %cst_29 = arith.constant 0.00999999977 : f32
    %37 = vector.broadcast %cst_29 : f32 to vector<16x256xf32>
    %38 = arith.mulf %37, %36 : vector<16x256xf32>
    %39 = arith.maximumf %36, %38 : vector<16x256xf32>
    %c0_30 = arith.constant 0 : index
    %c0_31 = arith.constant 0 : index
    %40 = vector.load %arg12[%c0_30, %c0_31] : memref<16x1xf32, #tpu.memory_space<vmem>>, vector<16x1xf32>
    %41 = vector.broadcast %40 : vector<16x1xf32> to vector<16x256xf32>
    %42 = arith.mulf %41, %39 : vector<16x256xf32>
    %cst_32 = arith.constant dense<0.000000e+00> : vector<256xf32>
    %43 = vector.multi_reduction <add>, %42, %cst_32 [0] : vector<16x256xf32> to vector<256xf32>
    %44 = vector.shape_cast %43 : vector<256xf32> to vector<1x256xf32>
    %c0_33 = arith.constant 0 : index
    %c0_34 = arith.constant 0 : index
    %45 = vector.load %arg13[%c0_33, %c0_34] : memref<1x1xf32, #tpu.memory_space<vmem>>, vector<1x1xf32>
    %46 = vector.broadcast %45 : vector<1x1xf32> to vector<1x256xf32>
    %47 = arith.addf %44, %46 : vector<1x256xf32>
    %c0_35 = arith.constant 0 : index
    %c0_36 = arith.constant 0 : index
    %48 = vector.load %arg14[%c0_35, %c0_36] : memref<1x256xf32, #tpu.memory_space<vmem>>, vector<1x256xf32>
    tpu.vector_store %arg14[%c0_35, %c0_36], %47 {strides = array<i32>} : memref<1x256xf32, #tpu.memory_space<vmem>>, vector<1x256xf32>,
    return
  }
  func.func @transform_0(%arg0: i32) -> (i32, i32) {
    %c0_i32 = arith.constant 0 : i32
    %c0_i32_0 = arith.constant 0 : i32
    return %arg0, %c0_i32 : i32, i32
  }
  func.func @transform_1(%arg0: i32) -> (i32, i32) {
    %c0_i32 = arith.constant 0 : i32
    %c0_i32_0 = arith.constant 0 : i32
    %c0_i32_1 = arith.constant 0 : i32
    return %c0_i32, %c0_i32_0 : i32, i32
  }
  func.func @transform_2(%arg0: i32) -> (i32, i32) {
    %c0_i32 = arith.constant 0 : i32
    %c0_i32_0 = arith.constant 0 : i32
    %c0_i32_1 = arith.constant 0 : i32
    return %c0_i32, %c0_i32_0 : i32, i32
  }
  func.func @transform_3(%arg0: i32) -> (i32, i32) {
    %c0_i32 = arith.constant 0 : i32
    %c0_i32_0 = arith.constant 0 : i32
    %c0_i32_1 = arith.constant 0 : i32
    return %c0_i32, %c0_i32_0 : i32, i32
  }
  func.func @transform_4(%arg0: i32) -> (i32, i32) {
    %c0_i32 = arith.constant 0 : i32
    %c0_i32_0 = arith.constant 0 : i32
    %c0_i32_1 = arith.constant 0 : i32
    return %c0_i32, %c0_i32_0 : i32, i32
  }
  func.func @transform_5(%arg0: i32) -> (i32, i32) {
    %c0_i32 = arith.constant 0 : i32
    %c0_i32_0 = arith.constant 0 : i32
    %c0_i32_1 = arith.constant 0 : i32
    return %c0_i32, %c0_i32_0 : i32, i32
  }
  func.func @transform_6(%arg0: i32) -> (i32, i32) {
    %c0_i32 = arith.constant 0 : i32
    %c0_i32_0 = arith.constant 0 : i32
    %c0_i32_1 = arith.constant 0 : i32
    return %c0_i32, %c0_i32_0 : i32, i32
  }
  func.func @transform_7(%arg0: i32) -> (i32, i32) {
    %c0_i32 = arith.constant 0 : i32
    %c0_i32_0 = arith.constant 0 : i32
    %c0_i32_1 = arith.constant 0 : i32
    return %c0_i32, %c0_i32_0 : i32, i32
  }
  func.func @transform_8(%arg0: i32) -> (i32, i32) {
    %c0_i32 = arith.constant 0 : i32
    %c0_i32_0 = arith.constant 0 : i32
    %c0_i32_1 = arith.constant 0 : i32
    return %c0_i32, %c0_i32_0 : i32, i32
  }
  func.func @transform_9(%arg0: i32) -> (i32, i32) {
    %c0_i32 = arith.constant 0 : i32
    %c0_i32_0 = arith.constant 0 : i32
    %c0_i32_1 = arith.constant 0 : i32
    return %c0_i32, %c0_i32_0 : i32, i32
  }
  func.func @transform_10(%arg0: i32) -> (i32, i32) {
    %c0_i32 = arith.constant 0 : i32
    %c0_i32_0 = arith.constant 0 : i32
    %c0_i32_1 = arith.constant 0 : i32
    return %c0_i32, %c0_i32_0 : i32, i32
  }
  func.func @transform_11(%arg0: i32) -> (i32, i32) {
    %c0_i32 = arith.constant 0 : i32
    %c0_i32_0 = arith.constant 0 : i32
    %c0_i32_1 = arith.constant 0 : i32
    return %c0_i32, %c0_i32_0 : i32, i32
  }
  func.func @transform_12(%arg0: i32) -> (i32, i32) {
    %c0_i32 = arith.constant 0 : i32
    %c0_i32_0 = arith.constant 0 : i32
    %c0_i32_1 = arith.constant 0 : i32
    return %c0_i32, %c0_i32_0 : i32, i32
  }
  func.func @transform_13(%arg0: i32) -> (i32, i32) {
    %c0_i32 = arith.constant 0 : i32
    %c0_i32_0 = arith.constant 0 : i32
    return %c0_i32, %arg0 : i32, i32
  }
}

</mosaic_0001>

<bundles_post_ra>
// kernel: tpu_custom_call.1
= control target key start
LH: loop header
LB: loop body
LE: loop exit
PB: predicated region body
PF: predicated region fallthrough
CT: control target
= control target key end

     0   :  { %s2559_s0 = inlined_call_operand.vmem [shape: f32[512,32], index: 0, kind: input, shape index: {}]   ;;  %s2560_s1 = inlined_call_operand.vmem [shape: f32[128,32], index: 1, kind: input, shape index: {}]   ;;  %s2561_s2 = inlined_call_operand.vmem [shape: f32[128,1], index: 2, kind: input, shape index: {}]   ;;  %s2562_s3 = inlined_call_operand.vmem [shape: f32[64,128], index: 3, kind: input, shape index: {}]   ;;  %s2563_s4 = inlined_call_operand.vmem [shape: f32[64,1], index: 4, kind: input, shape index: {}]   ;;  %s2564_s5 = inlined_call_operand.vmem [shape: f32[32,64], index: 5, kind: input, shape index: {}]   ;;  %s2565_s6 = inlined_call_operand.vmem [shape: f32[32,1], index: 6, kind: input, shape index: {}]   ;;  %s2566_s7 = inlined_call_operand.vmem [shape: f32[32,32], index: 7, kind: input, shape index: {}]   ;;  %s2567_s8 = inlined_call_operand.vmem [shape: f32[32,1], index: 8, kind: input, shape index: {}]   ;;  %s2568_s9 = inlined_call_operand.vmem [shape: f32[16,32], index: 9, kind: input, shape index: {}]   ;;  %s2569_s10 = inlined_call_operand.vmem [shape: f32[16,1], index: 10, kind: input, shape index: {}]   ;;  %s2570_s11 = inlined_call_operand.vmem [shape: f32[16,1], index: 11, kind: input, shape index: {}]   ;;  %s2571_s12 = inlined_call_operand.<no memory space> [shape: f32[1,1], index: 12, kind: input, shape index: {}]   ;;  %s2572_s13 = inlined_call_operand.hbm [shape: f32[1,512], index: 13, kind: output, shape index: {}]  }
   0x1   :  { %2573 = sst [smem:[#allocation6_spill]] %s2559_s0  ;;  %v18_v0 = vstv %s2571_s12 }
   0x2   :  { %2574 = sst [smem:[#allocation7_spill]] %s2560_s1  ;;  %19 = vst [vmem:[#allocation2] sm:$0x1] %v18_v0 }
   0x3   :  { %20 = vsyncpa [#allocation4], 0 }
   0x4   :  { %22 = vsyncpa [#allocation4 + $0x1], 0  ;;  %s2118_s27 = smov 0   ;;  %s2120_s28 = smov 0  }
   0x5   :  { %s2122_s29 = smov 0   ;;  %s2124_s30 = smov 0  }
   0x6 LB: > { %s1685_s12 = sadd.s32 4294967295, %s2039_s30   ;;  %s1686_s14 = sadd.s32 4294967294, %s2039_s30   ;;  %s2039_s30 = sphi %s2124_s30, %s2584_s30   ;;  %s2035_s29 = sphi %s2122_s29, %s2583_s29   ;;  %s2031_s28 = sphi %s2120_s28, %s2582_s28   ;;  %s2027_s27 = sphi %s2118_s27, %s2581_s27  }
   0x7   : > { %s2141_s15 = sadd.s32 1, %s2039_s30   ;;  %s313_s16 = sadd.s32 1, %s2035_s29 }
   0x8   : > { %s310_s17 = ssub.s32 %s2039_s30, %s2141_s15  ;;  %p323_p0 = scmp.ne.s32.totalorder %s2035_s29, %s2031_s28 }
   0x9   : > { %p311_p1 = scmp.eq.s32.totalorder %s310_s17, 0  ;;  %p324_p2 = scmp.eq.s32.totalorder %s1685_s12, 1 }
   0xa   : > { %p329_p3 = scmp.ne.s32.totalorder %s2031_s28, %s2027_s27  ;;  %p330_p4 = scmp.eq.s32.totalorder %s1686_s14, 1 }
   0xb   : > { %s2151_s18 = scalar_select %p311_p1, %s2035_s29, %s313_s16  }
   0xc   : > { %p2153_p5 = por %p324_p2, %p323_p0  ;;  %p2157_p6 = por %p330_p4, %p329_p3 }
   0xd   : > { %p1689_p7 = scmp.ge.s32.totalorder %s2039_s30, 1  ;;  %p393_p8 = scmp.lt.s32.totalorder %s2039_s30, 3 }
   0xf   : > { %p394_p9 = pnand %p1689_p7, %p393_p8 }
  0x10   : > { %s2163_s21 = sshll.u32 (!%p394_p9), %s1685_s12, 5  ;;  %vm588_vm0 = vcmask (!%p394_p9), 261120   ;;  %s2577_s1 = sld [smem:[#allocation7_spill]] (!%p394_p9)  ;;  %v2041_v2 = vmov (!%p394_p9), 0   ;;  %v492_v3 = vld [vmem:[%s2561_s2] sm:$0xff] (!%p394_p9)  ;;  %v494_v4 = vld [vmem:[%s2561_s2 + $0x10] sm:$0xff] (!%p394_p9) }
  0x11   : > { %397 = sbr.rel (%p394_p9) target bundleno = 1366 (0x556), region = 72  ;;  %p438_p10 = scmp.lt.s32.totalorder (!%p394_p9), %s2163_s21, 63  ;;  %1975 = vset.pattern.permute.xlu0 (!%p394_p9), %v2041_v2  ;;  %1976 = vset.pattern.permute.xlu1 (!%p394_p9), %v2041_v2  ;;  %vm2187_vm1 = vmpackc.low (!%p394_p9), %vm588_vm0, %vm588_vm0  ;;  %v493_v6 = vld [vmem:[%s2561_s2 + $0x8] sm:$0xff] (!%p394_p9)  ;;  %v495_v7 = vld [vmem:[%s2561_s2 + $0x18] sm:$0xff] (!%p394_p9)  ;;  %vm1187_vm2 = vcmask (!%p394_p9), 523264  }
  0x12   : > { %510 = vperm.xlu0 (!%p394_p9), %1975, %v492_v3   ;;  %s2578_s0 = sld [smem:[#allocation6_spill]] (!%p394_p9)  ;;  %520 = vperm.xlu1 (!%p394_p9), %1976, %v494_v4   ;;  %v496_v17 = vld [vmem:[%s2561_s2 + $0x20] sm:$0xff] (!%p394_p9)  ;;  %v498_v22 = vld [vmem:[%s2561_s2 + $0x30] sm:$0xff] (!%p394_p9)  ;;  %v497_v25 = vld [vmem:[%s2561_s2 + $0x28] sm:$0xff] (!%p394_p9)  ;;  %s434_s16 = sand.u32 (!%p394_p9), 1, %s2031_s28  }
  0x13   : > { %v500_v26 = vld [vmem:[%s2561_s2 + $0x40] sm:$0xff] (!%p394_p9)  ;;  %v499_v29 = vld [vmem:[%s2561_s2 + $0x38] sm:$0xff] (!%p394_p9)  ;;  %v502_v32 = vld [vmem:[%s2561_s2 + $0x50] sm:$0xff] (!%p394_p9)  ;;  %s1690_s17 = sshll.u32 (!%p394_p9), %s434_s16, 1 }
  0x14   : > { %v501_v35 = vld [vmem:[%s2561_s2 + $0x48] sm:$0xff] (!%p394_p9)  ;;  %v504_v36 = vld [vmem:[%s2561_s2 + $0x60] sm:$0xff] (!%p394_p9)  ;;  %v503_v39 = vld [vmem:[%s2561_s2 + $0x58] sm:$0xff] (!%p394_p9)  ;;  %s436_s22 = scalar_lea.vmem (!%p394_p9), [#allocation3], %s1690_s17  ;;  %s2044_s17 = smov (!%p394_p9), [#allocation3]  }
  0x15   : > { %v506_v42 = vld [vmem:[%s2561_s2 + $0x70] sm:$0xff] (!%p394_p9)  ;;  %v505_v45 = vld [vmem:[%s2561_s2 + $0x68] sm:$0xff] (!%p394_p9)  ;;  %v966_v46 = vld [vmem:[%s2563_s4] sm:$0xff] (!%p394_p9) }
  0x16   : > { %v2168_v1 = vld [vmem:[%s2577_s1] sm:$0xff] (!%p394_p9)  ;;  %515 = vperm.xlu0 (!%p394_p9), %1975, %v493_v6   ;;  %525 = vperm.xlu1 (!%p394_p9), %1976, %v495_v7   ;;  %v507_v49 = vld [vmem:[%s2561_s2 + $0x78] sm:$0xff] (!%p394_p9)  ;;  %v968_v52 = vld [vmem:[%s2563_s4 + $0x10] sm:$0xff] (!%p394_p9) }
  0x17   : > { %1789 = vmatprep.mubr.msk.f32.mxu0 (!%p394_p9), %vm588_vm0, %v2168_v1  ;;  %v967_v55 = vld [vmem:[%s2563_s4 + $0x8] sm:$0xff] (!%p394_p9)  ;;  %v970_v56 = vld [vmem:[%s2563_s4 + $0x20] sm:$0xff] (!%p394_p9)  ;;  %v969_v59 = vld [vmem:[%s2563_s4 + $0x18] sm:$0xff] (!%p394_p9) }
  0x18   : > { %s439_s24 = scalar_select %p438_p10, %s2163_s21, 63  ;;  %v972_v62 = vld [vmem:[%s2563_s4 + $0x30] sm:$0xff]  ;;  %v971_v2 = vld [vmem:[%s2563_s4 + $0x28] sm:$0xff]  ;;  %v1163_v3 = vld [vmem:[%s2565_s6] sm:$0xff] }
  0x19   : > { %v973_v7 = vld [vmem:[%s2563_s4 + $0x38] sm:$0xff]  ;;  %v1445_v5 = vld [vmem:[%s2569_s10 + $0x8] sm:$0xff] }
  0x1a   : > { %s1692_s12 = sshll.u32 %s439_s24, 3  ;;  %530 = vperm.xlu0 %1975, %v496_v17   ;;  %535 = vperm.xlu1 %1976, %v497_v25   ;;  %v1166_v17 = vld [vmem:[%s2565_s6 + $0x18] sm:$0xff]  ;;  %v1577_v25 = vld [vmem:[#allocation2] sm:$0x1]  ;;  %s1627_s24 = sshll.u32 %s436_s22, 4  ;;  %s2519_s24 = int_to_ptr.vmem [resolvable:$true] %s1627_s24 }
  0x1b   : > { %s2183_s23 = scalar_lea.vmem %s2578_s0, %s1692_s12  ;;  %s2517_s12 = scalar_lea.hbm %s2572_s13, %s2163_s21 }
  0x1c   : > { %v460_v8 = vld [vmem:[%s2183_s23 + $0x80] sm:$0xff]  ;;  %v461_v9 = vld [vmem:[%s2183_s23 + $0x88] sm:$0xff]  ;;  %v462_v13 = vld [vmem:[%s2183_s23 + $0x90] sm:$0xff]  ;;  %s1977_s14 = scalar_lea.vmem %s2519_s24, 32  ;;  %s1981_s0 = sshll.u32 %s2044_s17, 4  ;;  %s1982_s0 = int_to_ptr.vmem [resolvable:$false] %s1981_s0 }
  0x1d   : > { %v444_v10 = vld [vmem:[%s2183_s23] sm:$0xff]  ;;  %v1821_v11 = vpack.c.bf16 %v461_v9, %v460_v8  ;;  %v445_v12 = vld [vmem:[%s2183_s23 + $0x8] sm:$0xff]  ;;  %v463_v14 = vld [vmem:[%s2183_s23 + $0x98] sm:$0xff]  ;;  %p1978_p11 = scmp.ne.s32.totalorder %s2519_s24, %s1977_s14  ;;  %p1984_p0 = scmp.lt.s32.totalorder %s2519_s24, %s1982_s0 }
  0x1e   : > { %v1824_v15 = vpack.c.bf16 %v445_v12, %v444_v10  ;;  %v1827_v16 = vpack.c.bf16 %v463_v14, %v462_v13  ;;  %v446_v18 = vld [vmem:[%s2183_s23 + $0x10] sm:$0xff]  ;;  %v447_v19 = vld [vmem:[%s2183_s23 + $0x18] sm:$0xff]  ;;  %v464_v20 = vld [vmem:[%s2183_s23 + $0xa0] sm:$0xff]  ;;  %540 = vperm.xlu0 %1975, %v498_v22   ;;  %545 = vperm.xlu1 %1976, %v499_v29  }
  0x1f   : > { %1823 = vmatprep.subr.msk.bf16.mxu0 %vm2187_vm1, %v1821_v11  ;;  %v465_v21 = vld [vmem:[%s2183_s23 + $0xa8] sm:$0xff]  ;;  %v1830_v23 = vpack.c.bf16 %v447_v19, %v446_v18  ;;  %v448_v27 = vld [vmem:[%s2183_s23 + $0x20] sm:$0xff]  ;;  %v466_v30 = vld [vmem:[%s2183_s23 + $0xb0] sm:$0xff]  ;;  %p1979_p12 = pnand %p1978_p11, %p2153_p5 }
  0x20   : > { %1826 = vmatpush3.bf16.xpose.msk.msra.mxu0 %vm2187_vm1, %v1824_v15  ;;  %v1833_v24 = vpack.c.bf16 %v465_v21, %v464_v20  ;;  %v449_v28 = vld [vmem:[%s2183_s23 + $0x28] sm:$0xff]  ;;  %v467_v31 = vld [vmem:[%s2183_s23 + $0xb8] sm:$0xff]  ;;  %v450_v37 = vld [vmem:[%s2183_s23 + $0x30] sm:$0xff] }
  0x21   : > { %1829 = vmatprep.subr.msk.bf16.mxu0 %vm2187_vm1, %v1827_v16  ;;  %v1836_v33 = vpack.c.bf16 %v449_v28, %v448_v27  ;;  %v1839_v34 = vpack.c.bf16 %v467_v31, %v466_v30  ;;  %v451_v38 = vld [vmem:[%s2183_s23 + $0x38] sm:$0xff]  ;;  %v468_v40 = vld [vmem:[%s2183_s23 + $0xc0] sm:$0xff]  ;;  %v469_v41 = vld [vmem:[%s2183_s23 + $0xc8] sm:$0xff]  ;;  %p1980_p13 = pneg %p1979_p12 }
  0x22   : > { %550 = vperm.xlu0 %1975, %v500_v26   ;;  %555 = vperm.xlu1 %1976, %v501_v35   ;;  %v1842_v43 = vpack.c.bf16 %v451_v38, %v450_v37  ;;  %v1845_v44 = vpack.c.bf16 %v469_v41, %v468_v40  ;;  %v452_v47 = vld [vmem:[%s2183_s23 + $0x40] sm:$0xff]  ;;  %v453_v48 = vld [vmem:[%s2183_s23 + $0x48] sm:$0xff]  ;;  %v470_v50 = vld [vmem:[%s2183_s23 + $0xd0] sm:$0xff]  ;;  %v2042_v40 = vmov 0.0  }
  0x23   : > { %v471_v51 = vld [vmem:[%s2183_s23 + $0xd8] sm:$0xff]  ;;  %v1848_v53 = vpack.c.bf16 %v453_v48, %v452_v47  ;;  %v454_v57 = vld [vmem:[%s2183_s23 + $0x50] sm:$0xff]  ;;  %v472_v60 = vld [vmem:[%s2183_s23 + $0xe0] sm:$0xff]  ;;  %1078 = vmatprep.mubr.f32.mxu1 %v2042_v40 }
  0x24   : > { %v1851_v54 = vpack.c.bf16 %v471_v51, %v470_v50  ;;  %v455_v58 = vld [vmem:[%s2183_s23 + $0x58] sm:$0xff]  ;;  %v473_v61 = vld [vmem:[%s2183_s23 + $0xe8] sm:$0xff]  ;;  %v456_v4 = vld [vmem:[%s2183_s23 + $0x60] sm:$0xff] }
  0x25   : > { %v1854_v63 = vpack.c.bf16 %v455_v58, %v454_v57  ;;  %v1857_v0 = vpack.c.bf16 %v473_v61, %v472_v60  ;;  %v457_v6 = vld [vmem:[%s2183_s23 + $0x68] sm:$0xff]  ;;  %v474_v8 = vld [vmem:[%s2183_s23 + $0xf0] sm:$0xff]  ;;  %v475_v9 = vld [vmem:[%s2183_s23 + $0xf8] sm:$0xff] }
  0x26   : > { %560 = vperm.xlu0 %1975, %v502_v32   ;;  %565 = vperm.xlu1 %1976, %v503_v39   ;;  %v1165_v10 = vld [vmem:[%s2565_s6 + $0x10] sm:$0xff]  ;;  %v1860_v11 = vpack.c.bf16 %v457_v6, %v456_v4  ;;  %v1863_v12 = vpack.c.bf16 %v475_v9, %v474_v8  ;;  %v1164_v13 = vld [vmem:[%s2565_s6 + $0x8] sm:$0xff]  ;;  %v1301_v14 = vld [vmem:[%s2567_s8] sm:$0xff] }
  0x27   : > { %v458_v15 = vld [vmem:[%s2183_s23 + $0x70] sm:$0xff]  ;;  %v459_v16 = vld [vmem:[%s2183_s23 + $0x78] sm:$0xff]  ;;  %v1302_v20 = vld [vmem:[%s2567_s8 + $0x8] sm:$0xff]  ;;  %s1613_s23 = scalar_lea.sflag [#allocation4], %s434_s16 }
  0x28   : > { %1832 = vmatpush3.bf16.xpose.msk.msra.mxu0 %vm2187_vm1, %v1830_v23  ;;  %v1303_v18 = vld [vmem:[%s2567_s8 + $0x10] sm:$0xff]  ;;  %v1866_v19 = vpack.c.bf16 %v459_v16, %v458_v15  ;;  %v1444_v21 = vld [vmem:[%s2569_s10] sm:$0xff]  ;;  %v1304_v22 = vld [vmem:[%s2567_s8 + $0x18] sm:$0xff] }
  0x29   : > { %1835 = vmatprep.subr.msk.bf16.mxu0 %vm2187_vm1, %v1833_v24  ;;  %v1547_v23 = vld [vmem:[%s2570_s11] sm:$0xff]  ;;  %v477_v24 = vld [vmem:[%s2577_s1 + $0x8] sm:$0xff]  ;;  %v478_v26 = vld [vmem:[%s2577_s1 + $0x10] sm:$0xff] }
  0x2a   : > { %570 = vperm.xlu0 %1975, %v504_v36   ;;  %575 = vperm.xlu1 %1976, %v505_v45   ;;  %v1548_v27 = vld [vmem:[%s2570_s11 + $0x8] sm:$0xff]  ;;  %v480_v28 = vld [vmem:[%s2577_s1 + $0x20] sm:$0xff]  ;;  %v482_v30 = vld [vmem:[%s2577_s1 + $0x30] sm:$0xff] }
  0x2b   : > { %v481_v29 = vld [vmem:[%s2577_s1 + $0x28] sm:$0xff]  ;;  %v483_v31 = vld [vmem:[%s2577_s1 + $0x38] sm:$0xff]  ;;  %v484_v32 = vld [vmem:[%s2577_s1 + $0x40] sm:$0xff] }
  0x2c   : > { %v487_v35 = vld [vmem:[%s2577_s1 + $0x58] sm:$0xff]  ;;  %v488_v36 = vld [vmem:[%s2577_s1 + $0x60] sm:$0xff]  ;;  %v489_v37 = vld [vmem:[%s2577_s1 + $0x68] sm:$0xff] }
  0x2d   : > { %v490_v38 = vld [vmem:[%s2577_s1 + $0x70] sm:$0xff]  ;;  %v491_v39 = vld [vmem:[%s2577_s1 + $0x78] sm:$0xff] }
  0x2e   : > { %580 = vperm.xlu0 %1975, %v506_v42   ;;  %585 = vperm.xlu1 %1976, %v507_v49  }
  0x30   : > { %1838 = vmatpush3.bf16.xpose.msk.msra.mxu0 %vm2187_vm1, %v1836_v33  ;;  %v485_v33 = vld [vmem:[%s2577_s1 + $0x48] sm:$0xff] }
  0x31   : > { %1841 = vmatprep.subr.msk.bf16.mxu0 %vm2187_vm1, %v1839_v34  ;;  %v486_v34 = vld [vmem:[%s2577_s1 + $0x50] sm:$0xff] }
  0x32   : > { %976 = vperm.xlu0 %1975, %v966_v46   ;;  %981 = vperm.xlu1 %1976, %v967_v55  }
  0x36   : > { %986 = vperm.xlu0 %1975, %v968_v52   ;;  %991 = vperm.xlu1 %1976, %v969_v59  }
  0x38   : > { %1844 = vmatpush3.bf16.xpose.msk.msra.mxu0 %vm2187_vm1, %v1842_v43 }
  0x39   : > { %1847 = vmatprep.subr.msk.bf16.mxu0 %vm2187_vm1, %v1845_v44 }
  0x3a   : > { %996 = vperm.xlu0 %1975, %v970_v56   ;;  %1001 = vperm.xlu1 %1976, %v971_v2  }
  0x3e   : > { %1006 = vperm.xlu0 %1975, %v972_v62   ;;  %1011 = vperm.xlu1 %1976, %v973_v7  }
  0x40   : > { %1850 = vmatpush3.bf16.xpose.msk.msra.mxu0 %vm2187_vm1, %v1848_v53 }
  0x41   : > { %1853 = vmatprep.subr.msk.bf16.mxu0 %vm2187_vm1, %v1851_v54 }
  0x42   : > { %1169 = vperm.xlu0 %1975, %v1163_v3   ;;  %1174 = vperm.xlu1 %1976, %v1164_v13  }
  0x46   : > { %1179 = vperm.xlu0 %1975, %v1165_v10   ;;  %1184 = vperm.xlu1 %1976, %v1166_v17  }
  0x48   : > { %1856 = vmatpush3.bf16.xpose.msk.msra.mxu0 %vm2187_vm1, %v1854_v63 }
  0x49   : > { %1859 = vmatprep.subr.msk.bf16.mxu0 %vm2187_vm1, %v1857_v0 }
  0x4a   : > { %1307 = vperm.xlu0 %1975, %v1301_v14   ;;  %1312 = vperm.xlu1 %1976, %v1302_v20  }
  0x4e   : > { %1317 = vperm.xlu0 %1975, %v1303_v18   ;;  %1322 = vperm.xlu1 %1976, %v1304_v22  }
  0x50   : > { %1862 = vmatpush3.bf16.xpose.msk.msra.mxu0 %vm2187_vm1, %v1860_v11 }
  0x51   : > { %1865 = vmatprep.subr.msk.bf16.mxu0 %vm2187_vm1, %v1863_v12 }
  0x52   : > { %1448 = vperm.xlu0 %1975, %v1444_v21   ;;  %1453 = vperm.xlu1 %1976, %v1445_v5  }
  0x56   : > { %1551 = vperm.xlu0 %1975, %v1547_v23   ;;  %1556 = vperm.xlu1 %1976, %v1548_v27  }
  0x58   : > { %1868 = vmatpush3.bf16.xpose.msk.msra.mxu0 %vm2187_vm1, %v1866_v19 }
  0x5a   : > { %1580 = vperm.xlu0 %1975, %v1577_v25  }
  0x5f   : > { %1790 = vmatmul.mubr.msk.f32.vlgmr.msra.gmra.mrb[0].mxu0 %vm588_vm0, %v2168_v1  ;;  %v479_v1 = vld [vmem:[%s2577_s1 + $0x18] sm:$0xff]  ;;  %s1983_s1 = scalar_lea.vmem %s1982_s0, 64 }
  0x60   : > { %1791 = vmatprep.mubr.msk.f32.mxu0 %vm588_vm0, %v477_v24  ;;  %p1985_p1 = scmp.lt.s32.totalorder %s1983_s1, %s1977_s14 }
  0x62   : > { %p1986_p2 = por %p1985_p1, %p1984_p0 }
  0x63   : > { %1792 = vmatmul.mubr.msk.f32.gmra.mrb[2].mxu0 %vm588_vm0, %v477_v24 }
  0x64   : > { %1793 = vmatprep.mubr.msk.f32.mxu0 %vm588_vm0, %v478_v26  ;;  %p1987_p3 = pnand %p1986_p2, %p1980_p13 }
  0x67   : > { %1794 = vmatmul.mubr.msk.f32.gmra.mrb[4].mxu0 %vm588_vm0, %v478_v26 }
  0x68   : > { %1795 = vmatprep.mubr.msk.f32.mxu0 %vm588_vm0, %v479_v1 }
  0x6b   : > { %1796 = vmatmul.mubr.msk.f32.gmra.mrb[6].mxu0 %vm588_vm0, %v479_v1 }
  0x6c   : > { %1797 = vmatprep.mubr.msk.f32.mxu0 %vm588_vm0, %v480_v28 }
  0x6f   : > { %1798 = vmatmul.mubr.msk.f32.gmra.mrb[8].mxu0 %vm588_vm0, %v480_v28 }
  0x70   : > { %1799 = vmatprep.mubr.msk.f32.mxu0 %vm588_vm0, %v481_v29 }
  0x73   : > { %1800 = vmatmul.mubr.msk.f32.gmra.mrb[10].mxu0 %vm588_vm0, %v481_v29 }
  0x74   : > { %1801 = vmatprep.mubr.msk.f32.mxu0 %vm588_vm0, %v482_v30 }
  0x77   : > { %1802 = vmatmul.mubr.msk.f32.gmra.mrb[12].mxu0 %vm588_vm0, %v482_v30 }
  0x78   : > { %1803 = vmatprep.mubr.msk.f32.mxu0 %vm588_vm0, %v483_v31 }
  0x7b   : > { %1804 = vmatmul.mubr.msk.f32.gmra.mrb[14].mxu0 %vm588_vm0, %v483_v31 }
  0x7c   : > { %1805 = vmatprep.mubr.msk.f32.mxu0 %vm588_vm0, %v484_v32 }
  0x7f   : > { %1806 = vmatmul.mubr.msk.f32.gmra.mrb[16].mxu0 %vm588_vm0, %v484_v32 }
  0x80   : > { %1807 = vmatprep.mubr.msk.f32.mxu0 %vm588_vm0, %v485_v33 }
  0x83   : > { %1808 = vmatmul.mubr.msk.f32.gmra.mrb[18].mxu0 %vm588_vm0, %v485_v33 }
  0x84   : > { %1809 = vmatprep.mubr.msk.f32.mxu0 %vm588_vm0, %v486_v34 }
  0x87   : > { %1810 = vmatmul.mubr.msk.f32.gmra.mrb[20].mxu0 %vm588_vm0, %v486_v34 }
  0x88   : > { %1811 = vmatprep.mubr.msk.f32.mxu0 %vm588_vm0, %v487_v35 }
  0x8b   : > { %1812 = vmatmul.mubr.msk.f32.gmra.mrb[22].mxu0 %vm588_vm0, %v487_v35 }
  0x8c   : > { %1813 = vmatprep.mubr.msk.f32.mxu0 %vm588_vm0, %v488_v36 }
  0x8f   : > { %1814 = vmatmul.mubr.msk.f32.gmra.mrb[24].mxu0 %vm588_vm0, %v488_v36 }
  0x90   : > { %1815 = vmatprep.mubr.msk.f32.mxu0 %vm588_vm0, %v489_v37 }
  0x91   : > { %v511_v41 = vpop.permute.xlu0 %510  ;;  %v521_v51 = vpop.permute.xlu1 %520 }
  0x93   : > { %1816 = vmatmul.mubr.msk.f32.gmra.mrb[26].mxu0 %vm588_vm0, %v489_v37 }
  0x94   : > { %1817 = vmatprep.mubr.msk.f32.mxu0 %vm588_vm0, %v490_v38 }
  0x95   : > { %v516_v46 = vpop.permute.xlu0 %515  ;;  %v526_v2 = vpop.permute.xlu1 %525 }
  0x97   : > { %1818 = vmatmul.mubr.msk.f32.gmra.mrb[28].mxu0 %vm588_vm0, %v490_v38 }
  0x98   : > { %1819 = vmatprep.mubr.msk.f32.mxu0 %vm588_vm0, %v491_v39 }
  0x99   : > { %v531_v12 = vpop.permute.xlu0 %530  ;;  %v536_v23 = vpop.permute.xlu1 %535 }
  0x9b   : > { %1820 = vmatmul.mubr.msk.f32.gmra.mrb[30].mxu0 %vm588_vm0, %v491_v39 }
  0x9d   : > { %v541_v30 = vpop.permute.xlu0 %540 }
 0x132   : > { %v799_v42 = vpop.f32.mrb[0].mxu0 }
 0x133   : > { %v800_v43 = vadd.f32 %v799_v42, %v511_v41  ;;  %v801_v44 = vpop.f32.mrb[1].mxu0  ;;  %v546_v42 = vpop.permute.xlu1 %545 }
 0x134   : > { %v802_v45 = vadd.f32 %v801_v44, %v511_v41 }
 0x135   : > { %v894_v48 = vmul.f32 0.01, %v800_v43 }
 0x136   : > { %v805_v47 = vpop.f32.mrb[2].mxu0  ;;  %v895_v52 = vmul.f32 0.01, %v802_v45 }
 0x137   : > { %v806_v49 = vadd.f32 %v805_v47, %v516_v46  ;;  %v807_v50 = vpop.f32.mrb[3].mxu0  ;;  %v926_v57 = vmax.f32 %v800_v43, %v894_v48 }
 0x138   : > { %v808_v53 = vadd.f32 %v807_v50, %v516_v46  ;;  %v927_v62 = vmax.f32 %v802_v45, %v895_v52 }
 0x139   : > { %v896_v54 = vmul.f32 0.01, %v806_v49 }
 0x13a   : > { %v897_v55 = vmul.f32 0.01, %v808_v53  ;;  %v811_v56 = vpop.f32.mrb[4].mxu0 }
 0x13b   : > { %v928_v58 = vmax.f32 %v806_v49, %v896_v54  ;;  %v812_v59 = vadd.f32 %v811_v56, %v521_v51  ;;  %v813_v60 = vpop.f32.mrb[5].mxu0 }
 0x13c   : > { %v814_v61 = vadd.f32 %v813_v60, %v521_v51  ;;  %v929_v63 = vmax.f32 %v808_v53, %v897_v55  ;;  %v551_v51 = vpop.permute.xlu0 %550 }
 0x13d   : > { %v1871_v0 = vpack.c.bf16 %v928_v58, %v926_v57  ;;  %v898_v6 = vmul.f32 0.01, %v812_v59 }
 0x13e   : > { %v817_v3 = vpop.f32.mrb[6].mxu0  ;;  %v1869_v4 = vpack.c.bf16 %v929_v63, %v927_v62  ;;  %v899_v9 = vmul.f32 0.01, %v814_v61  ;;  %v556_v62 = vpop.permute.xlu1 %555 }
 0x13f   : > { %v818_v7 = vadd.f32 %v817_v3, %v526_v2  ;;  %v819_v8 = vpop.f32.mrb[7].mxu0  ;;  %v930_v15 = vmax.f32 %v812_v59, %v898_v6 }
 0x140   : > { %v820_v10 = vadd.f32 %v819_v8, %v526_v2  ;;  %1870 = vmatprep.subr.bf16.mxu1 %v1869_v4  ;;  %v931_v19 = vmax.f32 %v814_v61, %v899_v9  ;;  %v561_v9 = vpop.permute.xlu0 %560 }
 0x141   : > { %v900_v11 = vmul.f32 0.01, %v818_v7  ;;  %1872 = vmatpush1.bf16.msra.mxu1 %v1871_v0 }
 0x142   : > { %v901_v13 = vmul.f32 0.01, %v820_v10  ;;  %v823_v14 = vpop.f32.mrb[8].mxu0 }
 0x143   : > { %v932_v16 = vmax.f32 %v818_v7, %v900_v11  ;;  %v824_v17 = vadd.f32 %v823_v14, %v531_v12  ;;  %v825_v18 = vpop.f32.mrb[9].mxu0 }
 0x144   : > { %v933_v20 = vmax.f32 %v820_v10, %v901_v13  ;;  %v826_v21 = vadd.f32 %v825_v18, %v531_v12 }
 0x145   : > { %v1875_v22 = vpack.c.bf16 %v932_v16, %v930_v15  ;;  %v902_v25 = vmul.f32 0.01, %v824_v17 }
 0x146   : > { %v829_v24 = vpop.f32.mrb[10].mxu0  ;;  %v1873_v5 = vpack.c.bf16 %v933_v20, %v931_v19  ;;  %v903_v1 = vmul.f32 0.01, %v826_v21  ;;  %v566_v20 = vpop.permute.xlu1 %565 }
 0x147   : > { %v830_v26 = vadd.f32 %v829_v24, %v536_v23  ;;  %v831_v27 = vpop.f32.mrb[11].mxu0  ;;  %v934_v33 = vmax.f32 %v824_v17, %v902_v25 }
 0x148   : > { %v832_v28 = vadd.f32 %v831_v27, %v536_v23  ;;  %1874 = vmatprep.subr.bf16.mxu1 %v1873_v5  ;;  %v935_v37 = vmax.f32 %v826_v21, %v903_v1  ;;  %v571_v1 = vpop.permute.xlu0 %570 }
 0x149   : > { %v904_v29 = vmul.f32 0.01, %v830_v26  ;;  %1876 = vmatpush1.bf16.msra.mxu1 %v1875_v22 }
 0x14a   : > { %v905_v31 = vmul.f32 0.01, %v832_v28  ;;  %v835_v32 = vpop.f32.mrb[12].mxu0 }
 0x14b   : > { %v936_v34 = vmax.f32 %v830_v26, %v904_v29  ;;  %v836_v35 = vadd.f32 %v835_v32, %v541_v30  ;;  %v837_v36 = vpop.f32.mrb[13].mxu0 }
 0x14c   : > { %v937_v38 = vmax.f32 %v832_v28, %v905_v31  ;;  %v838_v39 = vadd.f32 %v837_v36, %v541_v30 }
 0x14d   : > { %v1879_v41 = vpack.c.bf16 %v936_v34, %v934_v33  ;;  %v906_v45 = vmul.f32 0.01, %v836_v35 }
 0x14e   : > { %v841_v43 = vpop.f32.mrb[14].mxu0  ;;  %v1877_v44 = vpack.c.bf16 %v937_v38, %v935_v37  ;;  %v907_v48 = vmul.f32 0.01, %v838_v39  ;;  %v576_v38 = vpop.permute.xlu1 %575 }
 0x14f   : > { %v842_v46 = vadd.f32 %v841_v43, %v546_v42  ;;  %v843_v47 = vpop.f32.mrb[15].mxu0  ;;  %v938_v54 = vmax.f32 %v836_v35, %v906_v45 }
 0x150   : > { %v844_v49 = vadd.f32 %v843_v47, %v546_v42  ;;  %1878 = vmatprep.subr.bf16.mxu1 %v1877_v44  ;;  %v939_v58 = vmax.f32 %v838_v39, %v907_v48  ;;  %v581_v48 = vpop.permute.xlu0 %580 }
 0x151   : > { %v908_v50 = vmul.f32 0.01, %v842_v46  ;;  %1880 = vmatpush1.bf16.msra.mxu1 %v1879_v41 }
 0x152   : > { %v909_v52 = vmul.f32 0.01, %v844_v49  ;;  %v847_v53 = vpop.f32.mrb[16].mxu0 }
 0x153   : > { %v940_v55 = vmax.f32 %v842_v46, %v908_v50  ;;  %v848_v56 = vadd.f32 %v847_v53, %v551_v51  ;;  %v849_v57 = vpop.f32.mrb[17].mxu0 }
 0x154   : > { %v941_v59 = vmax.f32 %v844_v49, %v909_v52  ;;  %v850_v60 = vadd.f32 %v849_v57, %v551_v51 }
 0x155   : > { %v1883_v61 = vpack.c.bf16 %v940_v55, %v938_v54  ;;  %v910_v2 = vmul.f32 0.01, %v848_v56 }
 0x156   : > { %v853_v63 = vpop.f32.mrb[18].mxu0  ;;  %v1881_v0 = vpack.c.bf16 %v941_v59, %v939_v58  ;;  %v911_v6 = vmul.f32 0.01, %v850_v60  ;;  %v586_v59 = vpop.permute.xlu1 %585 }
 0x157   : > { %v854_v3 = vadd.f32 %v853_v63, %v556_v62  ;;  %v855_v4 = vpop.f32.mrb[19].mxu0  ;;  %v942_v12 = vmax.f32 %v848_v56, %v910_v2 }
 0x158   : > { %v856_v7 = vadd.f32 %v855_v4, %v556_v62  ;;  %1882 = vmatprep.subr.bf16.mxu1 %v1881_v0  ;;  %v943_v16 = vmax.f32 %v850_v60, %v911_v6 }
 0x159   : > { %v912_v8 = vmul.f32 0.01, %v854_v3  ;;  %1884 = vmatpush1.bf16.msra.mxu1 %v1883_v61 }
 0x15a   : > { %v913_v10 = vmul.f32 0.01, %v856_v7  ;;  %v859_v11 = vpop.f32.mrb[20].mxu0 }
 0x15b   : > { %v944_v13 = vmax.f32 %v854_v3, %v912_v8  ;;  %v860_v14 = vadd.f32 %v859_v11, %v561_v9  ;;  %v861_v15 = vpop.f32.mrb[21].mxu0 }
 0x15c   : > { %v945_v17 = vmax.f32 %v856_v7, %v913_v10  ;;  %v862_v18 = vadd.f32 %v861_v15, %v561_v9  ;;  %v960_v15 = vld [vmem:[%s2562_s3 + $0x10] sm:$0xff] }
 0x15d   : > { %v1887_v19 = vpack.c.bf16 %v944_v13, %v942_v12  ;;  %v914_v23 = vmul.f32 0.01, %v860_v14  ;;  %v958_v13 = vld [vmem:[%s2562_s3] sm:$0xff] }
 0x15e   : > { %v865_v21 = vpop.f32.mrb[22].mxu0  ;;  %v1885_v22 = vpack.c.bf16 %v945_v17, %v943_v16  ;;  %v915_v25 = vmul.f32 0.01, %v862_v18  ;;  %v961_v16 = vld [vmem:[%s2562_s3 + $0x18] sm:$0xff]  ;;  %v962_v17 = vld [vmem:[%s2562_s3 + $0x20] sm:$0xff] }
 0x15f   : > { %v866_v24 = vadd.f32 %v865_v21, %v566_v20  ;;  %v867_v5 = vpop.f32.mrb[23].mxu0  ;;  %v946_v30 = vmax.f32 %v860_v14, %v914_v23  ;;  %v959_v14 = vld [vmem:[%s2562_s3 + $0x8] sm:$0xff]  ;;  %v977_v21 = vpop.permute.xlu0 %976 }
 0x160   : > { %v868_v26 = vadd.f32 %v867_v5, %v566_v20  ;;  %1886 = vmatprep.subr.bf16.mxu1 %v1885_v22  ;;  %v947_v34 = vmax.f32 %v862_v18, %v915_v25  ;;  %v963_v18 = vld [vmem:[%s2562_s3 + $0x28] sm:$0xff]  ;;  %v965_v20 = vld [vmem:[%s2562_s3 + $0x38] sm:$0xff]  ;;  %v982_v25 = vpop.permute.xlu1 %981 }
 0x161   : > { %v916_v27 = vmul.f32 0.01, %v866_v24  ;;  %1888 = vmatpush1.bf16.msra.mxu1 %v1887_v19  ;;  %v964_v19 = vld [vmem:[%s2562_s3 + $0x30] sm:$0xff] }
 0x162   : > { %v917_v28 = vmul.f32 0.01, %v868_v26  ;;  %v871_v29 = vpop.f32.mrb[24].mxu0 }
 0x163   : > { %v948_v31 = vmax.f32 %v866_v24, %v916_v27  ;;  %v872_v32 = vadd.f32 %v871_v29, %v571_v1  ;;  %v873_v33 = vpop.f32.mrb[25].mxu0 }
 0x164   : > { %v949_v35 = vmax.f32 %v868_v26, %v917_v28  ;;  %v874_v36 = vadd.f32 %v873_v33, %v571_v1 }
 0x165   : > { %v1891_v37 = vpack.c.bf16 %v948_v31, %v946_v30  ;;  %v918_v42 = vmul.f32 0.01, %v872_v32 }
 0x166   : > { %v877_v39 = vpop.f32.mrb[26].mxu0  ;;  %v1889_v41 = vpack.c.bf16 %v949_v35, %v947_v34  ;;  %v919_v45 = vmul.f32 0.01, %v874_v36 }
 0x167   : > { %v878_v43 = vadd.f32 %v877_v39, %v576_v38  ;;  %v879_v44 = vpop.f32.mrb[27].mxu0  ;;  %v950_v51 = vmax.f32 %v872_v32, %v918_v42  ;;  %v987_v32 = vpop.permute.xlu0 %986 }
 0x168   : > { %v880_v46 = vadd.f32 %v879_v44, %v576_v38  ;;  %1890 = vmatprep.subr.bf16.mxu1 %v1889_v41  ;;  %v951_v55 = vmax.f32 %v874_v36, %v919_v45  ;;  %v992_v44 = vpop.permute.xlu1 %991 }
 0x169   : > { %v920_v47 = vmul.f32 0.01, %v878_v43  ;;  %1892 = vmatpush1.bf16.msra.mxu1 %v1891_v37 }
 0x16a   : > { %v921_v49 = vmul.f32 0.01, %v880_v46  ;;  %v883_v50 = vpop.f32.mrb[28].mxu0 }
 0x16b   : > { %v952_v52 = vmax.f32 %v878_v43, %v920_v47  ;;  %v884_v53 = vadd.f32 %v883_v50, %v581_v48  ;;  %v885_v54 = vpop.f32.mrb[29].mxu0 }
 0x16c   : > { %v953_v56 = vmax.f32 %v880_v46, %v921_v49  ;;  %v886_v57 = vadd.f32 %v885_v54, %v581_v48 }
 0x16d   : > { %v1895_v58 = vpack.c.bf16 %v952_v52, %v950_v51  ;;  %v922_v62 = vmul.f32 0.01, %v884_v53 }
 0x16e   : > { %v889_v60 = vpop.f32.mrb[30].mxu0  ;;  %v1893_v61 = vpack.c.bf16 %v953_v56, %v951_v55  ;;  %v923_v2 = vmul.f32 0.01, %v886_v57 }
 0x16f   : > { %v890_v63 = vadd.f32 %v889_v60, %v586_v59  ;;  %v891_v0 = vpop.f32.mrb[31].mxu0  ;;  %v954_v7 = vmax.f32 %v884_v53, %v922_v62  ;;  %v997_v53 = vpop.permute.xlu0 %996 }
 0x170   : > { %v892_v3 = vadd.f32 %v891_v0, %v586_v59  ;;  %1894 = vmatprep.subr.bf16.mxu1 %v1893_v61  ;;  %v955_v9 = vmax.f32 %v886_v57, %v923_v2  ;;  %v1002_v0 = vpop.permute.xlu1 %1001 }
 0x171   : > { %v924_v4 = vmul.f32 0.01, %v890_v63  ;;  %1896 = vmatpush1.bf16.msra.mxu1 %v1895_v58 }
 0x172   : > { %v925_v6 = vmul.f32 0.01, %v892_v3 }
 0x173   : > { %v956_v8 = vmax.f32 %v890_v63, %v924_v4 }
 0x174   : > { %v957_v10 = vmax.f32 %v892_v3, %v925_v6 }
 0x175   : > { %v1899_v11 = vpack.c.bf16 %v956_v8, %v954_v7 }
 0x176   : > { %v1897_v12 = vpack.c.bf16 %v957_v10, %v955_v9 }
 0x178   : > { %1898 = vmatprep.subr.bf16.mxu1 %v1897_v12 }
 0x179   : > { %1900 = vmatpush1.bf16.msra.mxu1 %v1899_v11  ;;  %v1007_v11 = vpop.permute.xlu0 %1006 }
 0x17c   : > { %1079 = vmatmul.mubr.f32.vlgmr.msra.gmra.mrb[0].mxu1 %v958_v13 }
 0x17d   : > { %1084 = vmatprep.mubr.f32.mxu1 %v2042_v40 }
 0x180   : > { %1085 = vmatmul.mubr.f32.gmra.mrb[2].mxu1 %v959_v14 }
 0x181   : > { %1090 = vmatprep.mubr.f32.mxu1 %v2042_v40 }
 0x184   : > { %1091 = vmatmul.mubr.f32.gmra.mrb[4].mxu1 %v960_v15 }
 0x185   : > { %1096 = vmatprep.mubr.f32.mxu1 %v2042_v40 }
 0x188   : > { %1097 = vmatmul.mubr.f32.gmra.mrb[6].mxu1 %v961_v16 }
 0x189   : > { %1102 = vmatprep.mubr.f32.mxu1 %v2042_v40 }
 0x18c   : > { %1103 = vmatmul.mubr.f32.gmra.mrb[8].mxu1 %v962_v17 }
 0x18d   : > { %1108 = vmatprep.mubr.f32.mxu1 %v2042_v40 }
 0x190   : > { %1109 = vmatmul.mubr.f32.gmra.mrb[10].mxu1 %v963_v18 }
 0x191   : > { %1114 = vmatprep.mubr.f32.mxu1 %v2042_v40 }
 0x194   : > { %1115 = vmatmul.mubr.f32.gmra.mrb[12].mxu1 %v964_v19 }
 0x195   : > { %1120 = vmatprep.mubr.f32.mxu1 %v2042_v40 }
 0x198   : > { %1121 = vmatmul.mubr.f32.gmra.mrb[14].mxu1 %v965_v20 }
 0x199   : > { %1264 = vmatprep.mubr.f32.mxu1 %v2042_v40 }
 0x24f   : > { %v1080_v22 = vpop.f32.mrb[0].mxu1 }
 0x250   : > { %v1081_v23 = vadd.f32 %v1080_v22, %v977_v21  ;;  %v1082_v24 = vpop.f32.mrb[1].mxu1  ;;  %v1012_v22 = vpop.permute.xlu1 %1011 }
 0x251   : > { %v1083_v5 = vadd.f32 %v1082_v24, %v977_v21 }
 0x252   : > { %v1127_v27 = vmul.f32 0.01, %v1081_v23 }
 0x253   : > { %v1086_v26 = vpop.f32.mrb[2].mxu1  ;;  %v1128_v29 = vmul.f32 0.01, %v1083_v5 }
 0x254   : > { %v1087_v1 = vadd.f32 %v1086_v26, %v982_v25  ;;  %v1088_v28 = vpop.f32.mrb[3].mxu1  ;;  %v1143_v35 = vmax.f32 %v1081_v23, %v1127_v27 }
 0x255   : > { %v1089_v30 = vadd.f32 %v1088_v28, %v982_v25  ;;  %v1144_v39 = vmax.f32 %v1083_v5, %v1128_v29 }
 0x256   : > { %v1129_v31 = vmul.f32 0.01, %v1087_v1 }
 0x257   : > { %v1130_v33 = vmul.f32 0.01, %v1089_v30  ;;  %v1092_v34 = vpop.f32.mrb[4].mxu1 }
 0x258   : > { %v1145_v36 = vmax.f32 %v1087_v1, %v1129_v31  ;;  %v1093_v37 = vadd.f32 %v1092_v34, %v987_v32  ;;  %v1094_v38 = vpop.f32.mrb[5].mxu1 }
 0x259   : > { %v1146_v41 = vmax.f32 %v1089_v30, %v1130_v33  ;;  %v1095_v42 = vadd.f32 %v1094_v38, %v987_v32  ;;  %v1161_v38 = vld [vmem:[%s2564_s5 + $0x10] sm:$0xff] }
 0x25a   : > { %v1903_v43 = vpack.c.bf16 %v1145_v36, %v1143_v35  ;;  %v1131_v47 = vmul.f32 0.01, %v1093_v37  ;;  %v1159_v36 = vld [vmem:[%s2564_s5] sm:$0xff] }
 0x25b   : > { %v1098_v45 = vpop.f32.mrb[6].mxu1  ;;  %v1901_v46 = vpack.c.bf16 %v1146_v41, %v1144_v39  ;;  %v1132_v50 = vmul.f32 0.01, %v1095_v42  ;;  %v1162_v39 = vld [vmem:[%s2564_s5 + $0x18] sm:$0xff] }
 0x25c   : > { %v1099_v48 = vadd.f32 %v1098_v45, %v992_v44  ;;  %v1100_v49 = vpop.f32.mrb[7].mxu1  ;;  %v1147_v56 = vmax.f32 %v1093_v37, %v1131_v47  ;;  %v1160_v37 = vld [vmem:[%s2564_s5 + $0x8] sm:$0xff]  ;;  %v1175_v45 = vpop.permute.xlu1 %1174 }
 0x25d   : > { %v1101_v51 = vadd.f32 %v1100_v49, %v992_v44  ;;  %1902 = vmatprep.subr.bf16.mxu1 %v1901_v46  ;;  %v1148_v60 = vmax.f32 %v1095_v42, %v1132_v50 }
 0x25e   : > { %v1133_v52 = vmul.f32 0.01, %v1099_v48  ;;  %1904 = vmatpush1.bf16.msra.mxu1 %v1903_v43  ;;  %v1170_v43 = vpop.permute.xlu0 %1169 }
 0x25f   : > { %v1134_v54 = vmul.f32 0.01, %v1101_v51  ;;  %v1104_v55 = vpop.f32.mrb[8].mxu1 }
 0x260   : > { %v1149_v57 = vmax.f32 %v1099_v48, %v1133_v52  ;;  %v1105_v58 = vadd.f32 %v1104_v55, %v997_v53  ;;  %v1106_v59 = vpop.f32.mrb[9].mxu1 }
 0x261   : > { %v1150_v61 = vmax.f32 %v1101_v51, %v1134_v54  ;;  %v1107_v62 = vadd.f32 %v1106_v59, %v997_v53 }
 0x262   : > { %v1907_v63 = vpack.c.bf16 %v1149_v57, %v1147_v56  ;;  %v1135_v4 = vmul.f32 0.01, %v1105_v58 }
 0x263   : > { %v1110_v2 = vpop.f32.mrb[10].mxu1  ;;  %v1905_v3 = vpack.c.bf16 %v1150_v61, %v1148_v60  ;;  %v1136_v8 = vmul.f32 0.01, %v1107_v62  ;;  %v1185_v61 = vpop.permute.xlu1 %1184 }
 0x264   : > { %v1111_v6 = vadd.f32 %v1110_v2, %v1002_v0  ;;  %v1112_v7 = vpop.f32.mrb[11].mxu1  ;;  %v1151_v14 = vmax.f32 %v1105_v58, %v1135_v4  ;;  %v1180_v58 = vpop.permute.xlu0 %1179 }
 0x265   : > { %v1113_v9 = vadd.f32 %v1112_v7, %v1002_v0  ;;  %1906 = vmatprep.subr.bf16.mxu1 %v1905_v3  ;;  %v1152_v18 = vmax.f32 %v1107_v62, %v1136_v8 }
 0x266   : > { %v1137_v10 = vmul.f32 0.01, %v1111_v6  ;;  %1908 = vmatpush1.bf16.msra.mxu1 %v1907_v63 }
 0x267   : > { %v1138_v12 = vmul.f32 0.01, %v1113_v9  ;;  %v1116_v13 = vpop.f32.mrb[12].mxu1 }
 0x268   : > { %v1153_v15 = vmax.f32 %v1111_v6, %v1137_v10  ;;  %v1117_v16 = vadd.f32 %v1116_v13, %v1007_v11  ;;  %v1118_v17 = vpop.f32.mrb[13].mxu1  ;;  %v1299_v13 = vld [vmem:[%s2566_s7 + $0x10] sm:$0xff] }
 0x269   : > { %v1154_v19 = vmax.f32 %v1113_v9, %v1138_v12  ;;  %v1119_v20 = vadd.f32 %v1118_v17, %v1007_v11  ;;  %v1297_v11 = vld [vmem:[%s2566_s7] sm:$0xff]  ;;  %v1298_v12 = vld [vmem:[%s2566_s7 + $0x8] sm:$0xff] }
 0x26a   : > { %v1911_v21 = vpack.c.bf16 %v1153_v15, %v1151_v14  ;;  %v1139_v5 = vmul.f32 0.01, %v1117_v16  ;;  %v1300_v14 = vld [vmem:[%s2566_s7 + $0x18] sm:$0xff]  ;;  %v1308_v15 = vpop.permute.xlu0 %1307 }
 0x26b   : > { %v1122_v23 = vpop.f32.mrb[14].mxu1  ;;  %v1909_v24 = vpack.c.bf16 %v1154_v19, %v1152_v18  ;;  %v1140_v27 = vmul.f32 0.01, %v1119_v20 }
 0x26c   : > { %v1123_v25 = vadd.f32 %v1122_v23, %v1012_v22  ;;  %v1124_v26 = vpop.f32.mrb[15].mxu1  ;;  %v1155_v30 = vmax.f32 %v1117_v16, %v1139_v5 }
 0x26d   : > { %v1125_v1 = vadd.f32 %v1124_v26, %v1012_v22  ;;  %1910 = vmatprep.subr.bf16.mxu1 %v1909_v24  ;;  %v1156_v32 = vmax.f32 %v1119_v20, %v1140_v27  ;;  %v1313_v20 = vpop.permute.xlu1 %1312 }
 0x26e   : > { %v1141_v28 = vmul.f32 0.01, %v1123_v25  ;;  %1912 = vmatpush1.bf16.msra.mxu1 %v1911_v21  ;;  %v1318_v27 = vpop.permute.xlu0 %1317 }
 0x26f   : > { %v1142_v29 = vmul.f32 0.01, %v1125_v1 }
 0x270   : > { %v1157_v31 = vmax.f32 %v1123_v25, %v1141_v28 }
 0x271   : > { %v1158_v33 = vmax.f32 %v1125_v1, %v1142_v29 }
 0x272   : > { %v1915_v34 = vpack.c.bf16 %v1157_v31, %v1155_v30 }
 0x273   : > { %v1913_v35 = vpack.c.bf16 %v1158_v33, %v1156_v32 }
 0x275   : > { %1914 = vmatprep.subr.bf16.mxu1 %v1913_v35 }
 0x276   : > { %1916 = vmatpush1.bf16.msra.mxu1 %v1915_v34 }
 0x279   : > { %1741 = vmatmul.mubr.msk.f32.vlgmr.msra.gmra.mrb[16].mxu1 %vm1187_vm2, %v1159_v36 }
 0x27a   : > { %1270 = vmatprep.mubr.f32.mxu1 %v2042_v40 }
 0x27d   : > { %1742 = vmatmul.mubr.msk.f32.gmra.mrb[18].mxu1 %vm1187_vm2, %v1160_v37  ;;  %v1323_v37 = vpop.permute.xlu1 %1322 }
 0x27e   : > { %1276 = vmatprep.mubr.f32.mxu1 %v2042_v40 }
 0x281   : > { %1743 = vmatmul.mubr.msk.f32.gmra.mrb[20].mxu1 %vm1187_vm2, %v1161_v38 }
 0x282   : > { %1282 = vmatprep.mubr.f32.mxu1 %v2042_v40 }
 0x285   : > { %1744 = vmatmul.mubr.msk.f32.gmra.mrb[22].mxu1 %vm1187_vm2, %v1162_v39 }
 0x286   : > { %1401 = vmatprep.mubr.f32.mxu1 %v2042_v40 }
 0x34c   : > { %v1266_v41 = vpop.f32.mrb[16].mxu1 }
 0x34d   : > { %v1268_v42 = vpop.f32.mrb[17].mxu1  ;;  %v1267_v44 = vadd.f32 %v1266_v41, %v1170_v43 }
 0x34e   : > { %v1269_v46 = vadd.f32 %v1268_v42, %v1170_v43 }
 0x34f   : > { %v1289_v51 = vmax.f32 %v1267_v44, 0.0 }
 0x350   : > { %v1272_v47 = vpop.f32.mrb[18].mxu1  ;;  %v1290_v53 = vmax.f32 %v1269_v46, 0.0 }
 0x351   : > { %v1273_v48 = vadd.f32 %v1272_v47, %v1175_v45  ;;  %v1274_v49 = vpop.f32.mrb[19].mxu1 }
 0x352   : > { %v1275_v50 = vadd.f32 %v1274_v49, %v1175_v45 }
 0x353   : > { %v1291_v52 = vmax.f32 %v1273_v48, 0.0 }
 0x354   : > { %v1292_v54 = vmax.f32 %v1275_v50, 0.0  ;;  %v1278_v55 = vpop.f32.mrb[20].mxu1 }
 0x355   : > { %v1919_v56 = vpack.c.bf16 %v1291_v52, %v1289_v51  ;;  %v1280_v57 = vpop.f32.mrb[21].mxu1  ;;  %v1279_v60 = vadd.f32 %v1278_v55, %v1180_v58  ;;  %v1443_v55 = vld [vmem:[%s2568_s9 + $0x8] sm:$0xff] }
 0x356   : > { %v1917_v59 = vpack.c.bf16 %v1292_v54, %v1290_v53  ;;  %v1281_v62 = vadd.f32 %v1280_v57, %v1180_v58  ;;  %v1442_v54 = vld [vmem:[%s2568_s9] sm:$0xff] }
 0x357   : > { %v1293_v4 = vmax.f32 %v1279_v60, 0.0 }
 0x358   : > { %v1284_v63 = vpop.f32.mrb[22].mxu1  ;;  %1918 = vmatprep.subr.bf16.mxu1 %v1917_v59  ;;  %v1294_v7 = vmax.f32 %v1281_v62, 0.0  ;;  %v1454_v62 = vpop.permute.xlu1 %1453 }
 0x359   : > { %v1285_v0 = vadd.f32 %v1284_v63, %v1185_v61  ;;  %v1286_v2 = vpop.f32.mrb[23].mxu1  ;;  %1920 = vmatpush1.bf16.msra.mxu1 %v1919_v56  ;;  %v1449_v56 = vpop.permute.xlu0 %1448 }
 0x35a   : > { %v1287_v3 = vadd.f32 %v1286_v2, %v1185_v61 }
 0x35b   : > { %v1295_v6 = vmax.f32 %v1285_v0, 0.0 }
 0x35c   : > { %v1296_v8 = vmax.f32 %v1287_v3, 0.0 }
 0x35d   : > { %v1923_v9 = vpack.c.bf16 %v1295_v6, %v1293_v4 }
 0x35e   : > { %v1921_v10 = vpack.c.bf16 %v1296_v8, %v1294_v7 }
 0x360   : > { %1922 = vmatprep.subr.bf16.mxu1 %v1921_v10  ;;  %v1552_v10 = vpop.permute.xlu0 %1551 }
 0x361   : > { %1924 = vmatpush1.bf16.msra.mxu1 %v1923_v9 }
 0x364   : > { %1745 = vmatmul.mubr.msk.f32.vlgmr.msra.gmra.mrb[24].mxu1 %vm588_vm0, %v1297_v11  ;;  %v1557_v11 = vpop.permute.xlu1 %1556 }
 0x365   : > { %1407 = vmatprep.mubr.f32.mxu1 %v2042_v40 }
 0x368   : > { %1746 = vmatmul.mubr.msk.f32.gmra.mrb[26].mxu1 %vm588_vm0, %v1298_v12 }
 0x369   : > { %1413 = vmatprep.mubr.f32.mxu1 %v2042_v40 }
 0x36c   : > { %1747 = vmatmul.mubr.msk.f32.gmra.mrb[28].mxu1 %vm588_vm0, %v1299_v13 }
 0x36d   : > { %1419 = vmatprep.mubr.f32.mxu1 %v2042_v40 }
 0x370   : > { %1748 = vmatmul.mubr.msk.f32.gmra.mrb[30].mxu1 %vm588_vm0, %v1300_v14 }
 0x371   : > { %1526 = vmatprep.mubr.f32.mxu1 %v2042_v40 }
 0x437   : > { %v1403_v16 = vpop.f32.mrb[24].mxu1 }
 0x438   : > { %v1404_v17 = vadd.f32 %v1403_v16, %v1308_v15  ;;  %v1405_v18 = vpop.f32.mrb[25].mxu1 }
 0x439   : > { %v1406_v19 = vadd.f32 %v1405_v18, %v1308_v15 }
 0x43a   : > { %v1426_v22 = vmul.f32 0.01, %v1404_v17 }
 0x43b   : > { %v1409_v21 = vpop.f32.mrb[26].mxu1  ;;  %v1427_v5 = vmul.f32 0.01, %v1406_v19 }
 0x43c   : > { %v1410_v23 = vadd.f32 %v1409_v21, %v1313_v20  ;;  %v1411_v24 = vpop.f32.mrb[27].mxu1  ;;  %v1434_v29 = vmax.f32 %v1404_v17, %v1426_v22  ;;  %v1583_v17 = vlaneseq }
 0x43d   : > { %v1412_v25 = vadd.f32 %v1411_v24, %v1313_v20  ;;  %v1435_v33 = vmax.f32 %v1406_v19, %v1427_v5 }
 0x43e   : > { %v1428_v26 = vmul.f32 0.01, %v1410_v23  ;;  %v1584_v22 = vshrl.u32 %v1583_v17, 7  ;;  %vm1609_vm3 = vcmp.lt.s32.totalorder %v1583_v17, 256 }
 0x43f   : > { %v1429_v1 = vmul.f32 0.01, %v1412_v25  ;;  %v1415_v28 = vpop.f32.mrb[28].mxu1 }
 0x440   : > { %v1436_v30 = vmax.f32 %v1410_v23, %v1428_v26  ;;  %v1416_v31 = vadd.f32 %v1415_v28, %v1318_v27  ;;  %v1417_v32 = vpop.f32.mrb[29].mxu1 }
 0x441   : > { %v1437_v34 = vmax.f32 %v1412_v25, %v1429_v1  ;;  %v1418_v35 = vadd.f32 %v1417_v32, %v1318_v27  ;;  %v2043_v25 = vmov 1966171168   ;;  %v1585_v1 = vsub.s32 0, %v1584_v22 }
 0x442   : > { %v1927_v36 = vpack.c.bf16 %v1436_v30, %v1434_v29  ;;  %v1430_v41 = vmul.f32 0.01, %v1416_v31  ;;  %v1593_v26 = vunpack.c.l.s4 %v2043_v25  ;;  %v1581_v29 = vpop.permute.xlu0 %1580 }
 0x443   : > { %v1421_v38 = vpop.f32.mrb[30].mxu1  ;;  %v1925_v39 = vpack.c.bf16 %v1437_v34, %v1435_v33  ;;  %v1431_v44 = vmul.f32 0.01, %v1418_v35  ;;  %v1586_v34 = vrot.slane %v1581_v29, %v1585_v1 }
 0x444   : > { %v1422_v42 = vadd.f32 %v1421_v38, %v1323_v37  ;;  %v1423_v43 = vpop.f32.mrb[31].mxu1  ;;  %v1438_v48 = vmax.f32 %v1416_v31, %v1430_v41  ;;  %v1594_v32 = vunpack.c.0.s8 %v1593_v26 }
 0x445   : > { %v1424_v45 = vadd.f32 %v1423_v43, %v1323_v37  ;;  %1926 = vmatprep.subr.bf16.mxu1 %v1925_v39  ;;  %v1439_v50 = vmax.f32 %v1418_v35, %v1431_v44 }
 0x446   : > { %v1432_v46 = vmul.f32 0.01, %v1422_v42  ;;  %1928 = vmatpush1.bf16.msra.mxu1 %v1927_v36  ;;  %v1597_v38 = vsub.s32 %v1594_v32, %v1584_v22 }
 0x447   : > { %v1433_v47 = vmul.f32 0.01, %v1424_v45 }
 0x448   : > { %v1440_v49 = vmax.f32 %v1422_v42, %v1432_v46 }
 0x449   : > { %v1441_v51 = vmax.f32 %v1424_v45, %v1433_v47 }
 0x44a   : > { %v1931_v52 = vpack.c.bf16 %v1440_v49, %v1438_v48 }
 0x44b   : > { %v1929_v53 = vpack.c.bf16 %v1441_v51, %v1439_v50 }
 0x44d   : > { %1930 = vmatprep.subr.bf16.mxu1 %v1929_v53 }
 0x44e   : > { %1932 = vmatpush1.bf16.msra.mxu1 %v1931_v52 }
 0x451   : > { %1749 = vmatmul.mubr.msk.f32.vlgmr.msra.gmra.mrb[32].mxu1 %vm588_vm0, %v1442_v54 }
 0x452   : > { %1532 = vmatprep.mubr.f32.mxu1 %v2042_v40 }
 0x455   : > { %1750 = vmatmul.mubr.msk.f32.gmra.mrb[34].mxu1 %vm588_vm0, %v1443_v55 }
 0x524   : > { %v1528_v57 = vpop.f32.mrb[32].mxu1 }
 0x525   : > { %v1529_v58 = vadd.f32 %v1528_v57, %v1449_v56  ;;  %v1530_v59 = vpop.f32.mrb[33].mxu1 }
 0x526   : > { %v1531_v60 = vadd.f32 %v1530_v59, %v1449_v56 }
 0x527   : > { %v1539_v61 = vmul.f32 0.01, %v1529_v58 }
 0x528   : > { %v1540_v63 = vmul.f32 0.01, %v1531_v60  ;;  %v1534_v0 = vpop.f32.mrb[34].mxu1 }
 0x529   : > { %v1535_v2 = vadd.f32 %v1534_v0, %v1454_v62  ;;  %v1536_v3 = vpop.f32.mrb[35].mxu1  ;;  %v1543_v6 = vmax.f32 %v1529_v58, %v1539_v61 }
 0x52a   : > { %v1537_v4 = vadd.f32 %v1536_v3, %v1454_v62  ;;  %v1544_v7 = vmax.f32 %v1531_v60, %v1540_v63 }
 0x52b   : > { %v1541_v40 = vmul.f32 0.01, %v1535_v2  ;;  %v1559_v13 = vmul.f32 %v1552_v10, %v1543_v6 }
 0x52c   : > { %v1542_v8 = vmul.f32 0.01, %v1537_v4  ;;  %v1560_v15 = vmul.f32 %v1552_v10, %v1544_v7 }
 0x52d   : > { %v1545_v9 = vmax.f32 %v1535_v2, %v1541_v40 }
 0x52e   : > { %v1546_v12 = vmax.f32 %v1537_v4, %v1542_v8 }
 0x52f   : > { %v1561_v14 = vmul.f32 %v1557_v11, %v1545_v9 }
 0x530   : > { %v1562_v16 = vmul.f32 %v1557_v11, %v1546_v12 }
 0x531   : > { %v1563_v18 = vadd.f32 %v1561_v14, %v1559_v13 }
 0x532   : > { %v1570_v19 = vadd.f32 %v1562_v16, %v1560_v15 }
 0x533   : > { %v1564_v20 = vrot.slane %v1563_v18, 4 }
 0x534   : > { %v1571_v21 = vrot.slane %v1570_v19, 4 }
 0x535   : > { %v1565_v23 = vadd.f32 %v1564_v20, %v1563_v18 }
 0x536   : > { %v1572_v24 = vadd.f32 %v1571_v21, %v1570_v19 }
 0x537   : > { %v1566_v5 = vrot.slane %v1565_v23, 2 }
 0x538   : > { %v1573_v27 = vrot.slane %v1572_v24, 2 }
 0x539   : > { %v1567_v28 = vadd.f32 %v1566_v5, %v1565_v23 }
 0x53a   : > { %v1574_v30 = vadd.f32 %v1573_v27, %v1572_v24 }
 0x53b   : > { %v1568_v31 = vrot.slane %v1567_v28, 1 }
 0x53c   : > { %v1575_v33 = vrot.slane %v1574_v30, 1 }
 0x53d   : > { %v1569_v35 = vadd.f32 %v1568_v31, %v1567_v28 }
 0x53e   : > { %v1576_v36 = vadd.f32 %v1575_v33, %v1574_v30 }
 0x53f   : > { %v1587_v37 = vadd.f32 %v1586_v34, %v1569_v35 }
 0x540   : > { %v1588_v39 = vadd.f32 %v1586_v34, %v1576_v36 }
 0x542   : > { %v1591_v41 = vcombine.low %v1587_v37, %v1588_v39 }
 0x544   : > { %v1598_v42 = vrot.slane %v1591_v41, %v1597_v38 }
 0x546   : > { %v1605_v43 = vrot.slane %v1598_v42, %v1597_v38 }
 0x548   : > { %1611 = vst.msk [vmem:[%s436_s22] sm:$0x3] %vm1609_vm3, %v1605_v43 }
 0x549   : > { %1990 = shalt.err (!%p1987_p3)
}
 0x54a   : > { %s1991_s21 = scalar_lea.hbm %s2517_s12, 32  ;;  %s1995_s25 = scalar_lea.hbm %s2572_s13, 64 }
 0x54b   : > { %p1992_p4 = scmp.ne.s32.totalorder %s2517_s12, %s1991_s21  ;;  %p1996_p9 = scmp.lt.u32.totalorder %s2517_s12, %s2572_s13 }
 0x54c   : > { %p1997_p10 = scmp.lt.u32.totalorder %s1995_s25, %s1991_s21  ;;  %p1999_p12 = scmp.lt.u32.totalorder %s1991_s21, %s2517_s12 }
 0x54d   : > { %p1993_p7 = pnand %p1992_p4, %p2153_p5 }
 0x54e   : > { %p1998_p11 = por %p1997_p10, %p1996_p9 }
 0x54f   : > { %p1994_p8 = pneg %p1993_p7 }
 0x550   : > { %p2000_p13 = por %p1999_p12, %p1998_p11 }
 0x552   : > { %p2001_p0 = pnand %p2000_p13, %p1994_p8 }
 0x554   : > { %2004 = shalt.err (!%p2001_p0)
}
 0x555   : > { %1933 = dma.vmem_to_hbm [thread:$0]  (%p2153_p5), %s2519_s24, 32, %s2517_s12, %s1613_s23  }
 0x556 PF: > { %p1939_p1 = scmp.ge.s32.totalorder %s2039_s30, 2  ;;  %s1639_s1 = sand.u32 1, %s2027_s27  }
 0x557   : > { %s1640_s14 = scalar_lea.sflag [#allocation4], %s1639_s1 }
 0x558   : > { %p1936_p2 = pnand %p1939_p1, %p2157_p6 }
 0x55a   : > { %2022 = dma.done.wait (!%p1936_p2), %s1640_s14, 32  }
 0x55b   : > { %2024 = vsyncadd (!%p1936_p2), %s1640_s14, 4294967264  ;;  %p25_p3 = scmp.ge.s32.totalorder %s2141_s15, 4   ;;  %s2581_s27 = smov %s2031_s28 }
 0x55c   : > { %s2582_s28 = smov %s2035_s29  ;;  %s2583_s29 = smov %s2151_s18 }
 0x55d   : > { %s2584_s30 = smov %s2141_s15  ;;  %27 = sbr.rel (!%p25_p3) target bundleno = 6 (0x6), region = 107 }
 0x564   :  { %1645 = vsyncpa [#allocation4], 1 }
 0x565   :  { %1647 = vsyncpa [#allocation4 + $0x1], 1 }

</bundles_post_ra>
